<compile_context>
chip_gen: v7x
topology: tpu7x:2x2x1
jax: 0.10.0
libtpu: 0.0.40
codegen_flags: <defaults>
</compile_context>

<pallas_src>
import jax
import jax.numpy as jnp
from jax.experimental import pallas as pl
from jax.experimental.pallas import tpu as pltpu


def make_attention_kernel(num_heads, head_dim, rows, tokens, channels,
                          batch_block, compute_dtype):
    H, d, R, N, C, bb = num_heads, head_dim, rows, tokens, channels, batch_block

    def kernel(x_ref, wqkv_ref, wproj_ref, bias_ref, o_ref, merged_ref):
        # x_ref:      (R, C)   R = bb * N rows (bb batch elements, N tokens each)
        # wqkv_ref:   (C, 3C)  = W_qkv^T with columns [q | k | v]; Q columns pre-scaled
        # wproj_ref:  (C, C)   = W_proj^T (head-major rows match the merge order)
        # bias_ref:   (1, C)
        # o_ref:      (R, C)
        # merged_ref: (R, C)   VMEM scratch holding the merged per-head outputs
        x = x_ref[...].astype(compute_dtype)

        # Fused full-width QKV projection: one MXU pass, K = C, output width 3C.
        qkv = jnp.dot(x, wqkv_ref[...].astype(compute_dtype),
                      preferred_element_type=jnp.float32)               # (R, 3C) f32

        # Block-diagonal additive mask only when several batch elements are fused in
        # the row slab; built in-kernel (no O(R^2) HBM->VMEM DMA), f32 scores so the
        # -1e30 constant is safe.
        if bb > 1:
            row_b = jax.lax.broadcasted_iota(jnp.int32, (R, R), 0) // N
            col_b = jax.lax.broadcasted_iota(jnp.int32, (R, R), 1) // N
            neg_mask = jnp.where(row_b == col_b, 0.0, -1e30).astype(jnp.float32)

        nt_dims = (((1,), (1,)), ((), ()))   # contract last dims of both: A @ B^T
        for h in range(H):                   # unrolled; attention core is K=d by design
            q = qkv[:, h * d:(h + 1) * d].astype(compute_dtype)         # pre-scaled
            k = qkv[:, C + h * d:C + (h + 1) * d].astype(compute_dtype)
            v = qkv[:, 2 * C + h * d:2 * C + (h + 1) * d].astype(compute_dtype)

            s = jax.lax.dot_general(q, k, nt_dims,
                                    preferred_element_type=jnp.float32)  # (R, R)
            if bb > 1:
                s = s + neg_mask
            s = s - jnp.max(s, axis=-1, keepdims=True)
            p = jnp.exp(s)
            denom = jnp.sum(p, axis=-1, keepdims=True)                   # (R, 1)

            o = jnp.dot(p.astype(compute_dtype), v,
                        preferred_element_type=jnp.float32)              # (R, d)
            # Deferred softmax normalization: scale the (R, d) output, not (R, R).
            o = o * pl.reciprocal(denom, approx=True)
            merged_ref[:, h * d:(h + 1) * d] = o.astype(merged_ref.dtype)

        # Output projection fused with the head reduction: single MXU pass, K = H*d = C.
        out = jnp.dot(merged_ref[...], wproj_ref[...].astype(compute_dtype),
                      preferred_element_type=jnp.float32) + bias_ref[...]
        o_ref[...] = out.astype(o_ref.dtype)

    return kernel


def prepare_attention_params(w_qkv, w_proj, b_proj, *, num_heads):
    """One-time host-side re-layout of the PyTorch parameters.

    w_qkv:  (3C, C) nn.Linear weight (out_features, in_features), no bias.
    w_proj: (C, C)  nn.Linear weight.  b_proj: (C,).
    Returns:
      w_qkv_fused (C, 3C): x @ w_qkv_fused = [q*scale | k | v]; per-head column order
                           identical to the PyTorch chunk / 'b n (h d)' rearrange.
      w_proj_t    (C, C):  merged_heads @ w_proj_t == out @ W_proj^T.
      bias_2d     (1, C).
    """
    three_c, C = w_qkv.shape
    assert three_c == 3 * C
    H = num_heads
    d = C // H
    assert C == H * d
    scale = float(d) ** -0.5

    w_qkv_t = jnp.transpose(w_qkv)                           # (C, 3C)
    w_qkv_fused = jnp.concatenate(
        [w_qkv_t[:, :C] * scale, w_qkv_t[:, C:]], axis=-1)   # fold scale into Q cols
    w_proj_t = jnp.transpose(w_proj)                         # (C, C)
    return w_qkv_fused, w_proj_t, b_proj.reshape(1, C)


def _default_batch_block(batch, tokens):
    """bb = 1 at real CCT sizes (N >= 128); at small N, just enough batch elements to
    fill ~128 MXU rows — while keeping >= 2 grid steps (pipelining, v7x dual-TC) and
    8-row (sublane) alignment of the row block."""
    if tokens >= 128:
        bb = 1
    else:
        bb = min(batch, -(-128 // tokens))
    while bb > 1 and (batch % bb != 0 or batch // bb < 2 or (bb * tokens) % 8 != 0):
        bb -= 1
    if batch % bb != 0 or (bb * tokens) % 8 != 0:
        bb = batch          # block == full array: always a legal block shape
    return bb


def attention_forward(x, params, *, num_heads, batch_block=None, compute_dtype=None):
    """x: (B, N, C).  params: output of prepare_attention_params."""
    w_qkv_fused, w_proj_t, bias_2d = params
    B, N, C = x.shape
    H = num_heads
    d = C // H
    assert H * d == C

    bb = _default_batch_block(B, N) if batch_block is None else batch_block
    assert B % bb == 0, "batch_block must divide the batch size"
    R = bb * N
    assert R % 8 == 0 or bb == B, "row block must be sublane-aligned or cover the batch"
    cdt = x.dtype if compute_dtype is None else compute_dtype

    kernel = make_attention_kernel(H, d, R, N, C, bb, cdt)
    x_rows = x.reshape(B * N, C)          # wrapper-side layout plumbing only

    # VMEM budget: pipelined in/out row slabs + single-buffered weights + live f32
    # intermediates (qkv slab, a few score-sized temporaries, merged/projection slabs).
    itemsize = x.dtype.itemsize
    est = (2 * 2 * R * C * itemsize                # x in + out, double-buffered
           + (3 * C * C + C * C + C) * 4           # weights + bias, single-buffered
           + 4 * R * 3 * C                         # qkv slab (f32)
           + 4 * 4 * R * R                         # live score-sized temporaries
           + 4 * 3 * R * C)                        # merged / projection temporaries
    vmem_limit = int(min(max(2 * est, 16 * 1024 * 1024), 48 * 1024 * 1024))

    const_idx = lambda i: (0, 0)
    out_rows = pl.pallas_call(
        kernel,
        out_shape=jax.ShapeDtypeStruct((B * N, C), x.dtype),
        grid=(B // bb,),
        in_specs=[
            pl.BlockSpec((R, C), lambda i: (i, 0)),                 # row slab, pipelined
            pl.BlockSpec((C, 3 * C), const_idx,
                         pipeline_mode=pl.Buffered(1)),             # fetched once
            pl.BlockSpec((C, C), const_idx,
                         pipeline_mode=pl.Buffered(1)),
            pl.BlockSpec((1, C), const_idx,
                         pipeline_mode=pl.Buffered(1)),
        ],
        out_specs=pl.BlockSpec((R, C), lambda i: (i, 0)),
        scratch_shapes=[pltpu.VMEM((R, C), cdt)],                   # merged heads
        compiler_params=pltpu.CompilerParams(
            dimension_semantics=("parallel",),
            vmem_limit_bytes=vmem_limit),
    )(x_rows, w_qkv_fused, w_proj_t, bias_2d)

    return out_rows.reshape(B, N, C)


def attention_reference(x, w_qkv, w_proj, b_proj, *, num_heads):
    """Pure-JAX reference matching the PyTorch forward (eval mode)."""
    B, N, C = x.shape
    d = C // num_heads
    scale = float(d) ** -0.5
    qkv = jnp.einsum('bnc,oc->bno', x, w_qkv)            # (B, N, 3C)
    q, k, v = jnp.split(qkv, 3, axis=-1)

    def to_heads(t):
        return t.reshape(B, N, num_heads, d).transpose(0, 2, 1, 3)   # (B, h, N, d)

    q, k, v = map(to_heads, (q, k, v))
    q = q * scale
    attn = jnp.einsum('bhid,bhjd->bhij', q, k)
    attn = jax.nn.softmax(attn, axis=-1)
    out = jnp.einsum('bhij,bhjd->bhid', attn, v)
    out = out.transpose(0, 2, 1, 3).reshape(B, N, C)
    return jnp.einsum('bnc,oc->bno', out, w_proj) + b_proj


if __name__ == "__main__":
    # Small shapes consistent with the module: dim=32, 8 heads -> head_dim=4, seq=8.
    # (Validate here; measure at real CCT widths C >= 128 where output stores are
    #  lane-dense and bf16 compute pays off.)
    B, N, C = 2, 8, 32
    num_heads = 8

    key = jax.random.PRNGKey(0)
    kx, kq, kp, kb = jax.random.split(key, 4)

    x = jax.random.normal(kx, (B, N, C), dtype=jnp.float32)
    w_qkv = jax.random.uniform(kq, (3 * C, C), dtype=jnp.float32,
                               minval=-C ** -0.5, maxval=C ** -0.5)
    w_proj = jax.random.uniform(kp, (C, C), dtype=jnp.float32,
                                minval=-C ** -0.5, maxval=C ** -0.5)
    b_proj = jax.random.uniform(kb, (C,), dtype=jnp.float32,
                                minval=-C ** -0.5, maxval=C ** -0.5)

    params = prepare_attention_params(w_qkv, w_proj, b_proj, num_heads=num_heads)
    ref = attention_reference(x, w_qkv, w_proj, b_proj, num_heads=num_heads)

    # Default path: batch_block resolves to 1 here -> grid=(2,), no mask branch.
    out = attention_forward(x, params, num_heads=num_heads)
    out = jax.block_until_ready(out)
    assert out.shape == (B, N, C)
    # Tolerance slightly relaxed vs 1e-4 because of the approximate (EUP) reciprocal
    # in the softmax normalizer.
    assert jnp.allclose(out, ref, atol=5e-3, rtol=5e-3), "mismatch vs reference"

    # Also exercise the fused-batch path (bb > 1): in-kernel block-diagonal mask.
    out_fused = attention_forward(x, params, num_heads=num_heads, batch_block=2)
    out_fused = jax.block_until_ready(out_fused)
    assert jnp.allclose(out_fused, ref, atol=5e-3, rtol=5e-3), "fused-batch mismatch"

    print("KERNEL_OK")
</pallas_src>

<mosaic_0001>
module attributes {stable_mosaic.version = 11 : i64} {
  func.func @kernel(%arg0: i32, %arg1: memref<8x32xf32, #tpu.memory_space<vmem>>, %arg2: memref<32x96xf32, #tpu.memory_space<vmem>>, %arg3: memref<32x32xf32, #tpu.memory_space<vmem>>, %arg4: memref<1x32xf32, #tpu.memory_space<vmem>>, %arg5: memref<8x32xf32, #tpu.memory_space<vmem>>, %arg6: memref<8x32xf32, #tpu.memory_space<vmem>>) attributes {dimension_semantics = [#tpu.dimension_semantics<parallel>], iteration_bounds = array<i64: 2>, scalar_prefetch = 0 : i64, scratch_operands = 1 : i64, tpu.core_type = #tpu.core_type<tc>, window_params = [{transform_indices = @transform_0, window_bounds = array<i64: 8, 32>}, {pipeline_mode = #tpu.pipeline_mode<synchronous>, transform_indices = @transform_1, window_bounds = array<i64: 32, 96>}, {pipeline_mode = #tpu.pipeline_mode<synchronous>, transform_indices = @transform_2, window_bounds = array<i64: 32, 32>}, {pipeline_mode = #tpu.pipeline_mode<synchronous>, transform_indices = @transform_3, window_bounds = array<i64: 1, 32>}, {transform_indices = @transform_4, window_bounds = array<i64: 8, 32>}]} {
    %c0 = arith.constant 0 : index
    %c0_0 = arith.constant 0 : index
    %0 = vector.load %arg1[%c0, %c0_0] : memref<8x32xf32, #tpu.memory_space<vmem>>, vector<8x32xf32>
    %c0_1 = arith.constant 0 : index
    %c0_2 = arith.constant 0 : index
    %1 = vector.load %arg2[%c0_1, %c0_2] : memref<32x96xf32, #tpu.memory_space<vmem>>, vector<32x96xf32>
    %cst = arith.constant dense<0.000000e+00> : vector<8x96xf32>
    %2 = tpu.matmul %0, %1, %cst {dimension_numbers = #tpu.dot_dimension_numbers<[1], [0], [0], [1], [0, 0, 1, 1], [], []>} : vector<8x32xf32>, vector<32x96xf32>, vector<8x96xf32> -> vector<8x96xf32>
    %3 = vector.extract_strided_slice %2 {offsets = [0, 0], sizes = [8, 4], strides = [1, 1]} : vector<8x96xf32> to vector<8x4xf32>
    %4 = vector.extract_strided_slice %2 {offsets = [0, 32], sizes = [8, 4], strides = [1, 1]} : vector<8x96xf32> to vector<8x4xf32>
    %5 = vector.extract_strided_slice %2 {offsets = [0, 64], sizes = [8, 4], strides = [1, 1]} : vector<8x96xf32> to vector<8x4xf32>
    %cst_3 = arith.constant dense<0.000000e+00> : vector<8x8xf32>
    %6 = tpu.matmul %3, %4, %cst_3 {dimension_numbers = #tpu.dot_dimension_numbers<[1], [1], [0], [0], [0, 0, 1, 0], [], []>} : vector<8x4xf32>, vector<8x4xf32>, vector<8x8xf32> -> vector<8x8xf32>
    %cst_4 = arith.constant dense<0xFF800000> : vector<8xf32>
    %7 = vector.multi_reduction <maximumf>, %6, %cst_4 [1] : vector<8x8xf32> to vector<8xf32>
    %8 = vector.shape_cast %7 : vector<8xf32> to vector<8x1xf32>
    %9 = vector.broadcast %8 : vector<8x1xf32> to vector<8x8xf32>
    %10 = arith.subf %6, %9 : vector<8x8xf32>
    %11 = math.exp %10 : vector<8x8xf32>
    %cst_5 = arith.constant dense<0.000000e+00> : vector<8xf32>
    %12 = vector.multi_reduction <add>, %11, %cst_5 [1] : vector<8x8xf32> to vector<8xf32>
    %13 = vector.shape_cast %12 : vector<8xf32> to vector<8x1xf32>
    %cst_6 = arith.constant dense<0.000000e+00> : vector<8x4xf32>
    %14 = tpu.matmul %11, %5, %cst_6 {dimension_numbers = #tpu.dot_dimension_numbers<[1], [0], [0], [1], [0, 0, 1, 1], [], []>} : vector<8x8xf32>, vector<8x4xf32>, vector<8x4xf32> -> vector<8x4xf32>
    %15 = tpu.reciprocal %13 {approx = true} : vector<8x1xf32> -> vector<8x1xf32>
    %16 = vector.broadcast %15 : vector<8x1xf32> to vector<8x4xf32>
    %17 = arith.mulf %14, %16 : vector<8x4xf32>
    %c0_7 = arith.constant 0 : index
    %c0_8 = arith.constant 0 : index
    %18 = vector.load %arg6[%c0_7, %c0_8] : memref<8x32xf32, #tpu.memory_space<vmem>>, vector<8x4xf32>
    tpu.vector_store %arg6[%c0_7, %c0_8], %17 {strides = array<i32>} : memref<8x32xf32, #tpu.memory_space<vmem>>, vector<8x4xf32>,
    %19 = vector.extract_strided_slice %2 {offsets = [0, 4], sizes = [8, 4], strides = [1, 1]} : vector<8x96xf32> to vector<8x4xf32>
    %20 = vector.extract_strided_slice %2 {offsets = [0, 36], sizes = [8, 4], strides = [1, 1]} : vector<8x96xf32> to vector<8x4xf32>
    %21 = vector.extract_strided_slice %2 {offsets = [0, 68], sizes = [8, 4], strides = [1, 1]} : vector<8x96xf32> to vector<8x4xf32>
    %cst_9 = arith.constant dense<0.000000e+00> : vector<8x8xf32>
    %22 = tpu.matmul %19, %20, %cst_9 {dimension_numbers = #tpu.dot_dimension_numbers<[1], [1], [0], [0], [0, 0, 1, 0], [], []>} : vector<8x4xf32>, vector<8x4xf32>, vector<8x8xf32> -> vector<8x8xf32>
    %cst_10 = arith.constant dense<0xFF800000> : vector<8xf32>
    %23 = vector.multi_reduction <maximumf>, %22, %cst_10 [1] : vector<8x8xf32> to vector<8xf32>
    %24 = vector.shape_cast %23 : vector<8xf32> to vector<8x1xf32>
    %25 = vector.broadcast %24 : vector<8x1xf32> to vector<8x8xf32>
    %26 = arith.subf %22, %25 : vector<8x8xf32>
    %27 = math.exp %26 : vector<8x8xf32>
    %cst_11 = arith.constant dense<0.000000e+00> : vector<8xf32>
    %28 = vector.multi_reduction <add>, %27, %cst_11 [1] : vector<8x8xf32> to vector<8xf32>
    %29 = vector.shape_cast %28 : vector<8xf32> to vector<8x1xf32>
    %cst_12 = arith.constant dense<0.000000e+00> : vector<8x4xf32>
    %30 = tpu.matmul %27, %21, %cst_12 {dimension_numbers = #tpu.dot_dimension_numbers<[1], [0], [0], [1], [0, 0, 1, 1], [], []>} : vector<8x8xf32>, vector<8x4xf32>, vector<8x4xf32> -> vector<8x4xf32>
    %31 = tpu.reciprocal %29 {approx = true} : vector<8x1xf32> -> vector<8x1xf32>
    %32 = vector.broadcast %31 : vector<8x1xf32> to vector<8x4xf32>
    %33 = arith.mulf %30, %32 : vector<8x4xf32>
    %c0_13 = arith.constant 0 : index
    %c4 = arith.constant 4 : index
    %34 = vector.load %arg6[%c0_13, %c4] : memref<8x32xf32, #tpu.memory_space<vmem>>, vector<8x4xf32>
    tpu.vector_store %arg6[%c0_13, %c4], %33 {strides = array<i32>} : memref<8x32xf32, #tpu.memory_space<vmem>>, vector<8x4xf32>,
    %35 = vector.extract_strided_slice %2 {offsets = [0, 8], sizes = [8, 4], strides = [1, 1]} : vector<8x96xf32> to vector<8x4xf32>
    %36 = vector.extract_strided_slice %2 {offsets = [0, 40], sizes = [8, 4], strides = [1, 1]} : vector<8x96xf32> to vector<8x4xf32>
    %37 = vector.extract_strided_slice %2 {offsets = [0, 72], sizes = [8, 4], strides = [1, 1]} : vector<8x96xf32> to vector<8x4xf32>
    %cst_14 = arith.constant dense<0.000000e+00> : vector<8x8xf32>
    %38 = tpu.matmul %35, %36, %cst_14 {dimension_numbers = #tpu.dot_dimension_numbers<[1], [1], [0], [0], [0, 0, 1, 0], [], []>} : vector<8x4xf32>, vector<8x4xf32>, vector<8x8xf32> -> vector<8x8xf32>
    %cst_15 = arith.constant dense<0xFF800000> : vector<8xf32>
    %39 = vector.multi_reduction <maximumf>, %38, %cst_15 [1] : vector<8x8xf32> to vector<8xf32>
    %40 = vector.shape_cast %39 : vector<8xf32> to vector<8x1xf32>
    %41 = vector.broadcast %40 : vector<8x1xf32> to vector<8x8xf32>
    %42 = arith.subf %38, %41 : vector<8x8xf32>
    %43 = math.exp %42 : vector<8x8xf32>
    %cst_16 = arith.constant dense<0.000000e+00> : vector<8xf32>
    %44 = vector.multi_reduction <add>, %43, %cst_16 [1] : vector<8x8xf32> to vector<8xf32>
    %45 = vector.shape_cast %44 : vector<8xf32> to vector<8x1xf32>
    %cst_17 = arith.constant dense<0.000000e+00> : vector<8x4xf32>
    %46 = tpu.matmul %43, %37, %cst_17 {dimension_numbers = #tpu.dot_dimension_numbers<[1], [0], [0], [1], [0, 0, 1, 1], [], []>} : vector<8x8xf32>, vector<8x4xf32>, vector<8x4xf32> -> vector<8x4xf32>
    %47 = tpu.reciprocal %45 {approx = true} : vector<8x1xf32> -> vector<8x1xf32>
    %48 = vector.broadcast %47 : vector<8x1xf32> to vector<8x4xf32>
    %49 = arith.mulf %46, %48 : vector<8x4xf32>
    %c0_18 = arith.constant 0 : index
    %c8 = arith.constant 8 : index
    %50 = vector.load %arg6[%c0_18, %c8] : memref<8x32xf32, #tpu.memory_space<vmem>>, vector<8x4xf32>
    tpu.vector_store %arg6[%c0_18, %c8], %49 {strides = array<i32>} : memref<8x32xf32, #tpu.memory_space<vmem>>, vector<8x4xf32>,
    %51 = vector.extract_strided_slice %2 {offsets = [0, 12], sizes = [8, 4], strides = [1, 1]} : vector<8x96xf32> to vector<8x4xf32>
    %52 = vector.extract_strided_slice %2 {offsets = [0, 44], sizes = [8, 4], strides = [1, 1]} : vector<8x96xf32> to vector<8x4xf32>
    %53 = vector.extract_strided_slice %2 {offsets = [0, 76], sizes = [8, 4], strides = [1, 1]} : vector<8x96xf32> to vector<8x4xf32>
    %cst_19 = arith.constant dense<0.000000e+00> : vector<8x8xf32>
    %54 = tpu.matmul %51, %52, %cst_19 {dimension_numbers = #tpu.dot_dimension_numbers<[1], [1], [0], [0], [0, 0, 1, 0], [], []>} : vector<8x4xf32>, vector<8x4xf32>, vector<8x8xf32> -> vector<8x8xf32>
    %cst_20 = arith.constant dense<0xFF800000> : vector<8xf32>
    %55 = vector.multi_reduction <maximumf>, %54, %cst_20 [1] : vector<8x8xf32> to vector<8xf32>
    %56 = vector.shape_cast %55 : vector<8xf32> to vector<8x1xf32>
    %57 = vector.broadcast %56 : vector<8x1xf32> to vector<8x8xf32>
    %58 = arith.subf %54, %57 : vector<8x8xf32>
    %59 = math.exp %58 : vector<8x8xf32>
    %cst_21 = arith.constant dense<0.000000e+00> : vector<8xf32>
    %60 = vector.multi_reduction <add>, %59, %cst_21 [1] : vector<8x8xf32> to vector<8xf32>
    %61 = vector.shape_cast %60 : vector<8xf32> to vector<8x1xf32>
    %cst_22 = arith.constant dense<0.000000e+00> : vector<8x4xf32>
    %62 = tpu.matmul %59, %53, %cst_22 {dimension_numbers = #tpu.dot_dimension_numbers<[1], [0], [0], [1], [0, 0, 1, 1], [], []>} : vector<8x8xf32>, vector<8x4xf32>, vector<8x4xf32> -> vector<8x4xf32>
    %63 = tpu.reciprocal %61 {approx = true} : vector<8x1xf32> -> vector<8x1xf32>
    %64 = vector.broadcast %63 : vector<8x1xf32> to vector<8x4xf32>
    %65 = arith.mulf %62, %64 : vector<8x4xf32>
    %c0_23 = arith.constant 0 : index
    %c12 = arith.constant 12 : index
    %66 = vector.load %arg6[%c0_23, %c12] : memref<8x32xf32, #tpu.memory_space<vmem>>, vector<8x4xf32>
    tpu.vector_store %arg6[%c0_23, %c12], %65 {strides = array<i32>} : memref<8x32xf32, #tpu.memory_space<vmem>>, vector<8x4xf32>,
    %67 = vector.extract_strided_slice %2 {offsets = [0, 16], sizes = [8, 4], strides = [1, 1]} : vector<8x96xf32> to vector<8x4xf32>
    %68 = vector.extract_strided_slice %2 {offsets = [0, 48], sizes = [8, 4], strides = [1, 1]} : vector<8x96xf32> to vector<8x4xf32>
    %69 = vector.extract_strided_slice %2 {offsets = [0, 80], sizes = [8, 4], strides = [1, 1]} : vector<8x96xf32> to vector<8x4xf32>
    %cst_24 = arith.constant dense<0.000000e+00> : vector<8x8xf32>
    %70 = tpu.matmul %67, %68, %cst_24 {dimension_numbers = #tpu.dot_dimension_numbers<[1], [1], [0], [0], [0, 0, 1, 0], [], []>} : vector<8x4xf32>, vector<8x4xf32>, vector<8x8xf32> -> vector<8x8xf32>
    %cst_25 = arith.constant dense<0xFF800000> : vector<8xf32>
    %71 = vector.multi_reduction <maximumf>, %70, %cst_25 [1] : vector<8x8xf32> to vector<8xf32>
    %72 = vector.shape_cast %71 : vector<8xf32> to vector<8x1xf32>
    %73 = vector.broadcast %72 : vector<8x1xf32> to vector<8x8xf32>
    %74 = arith.subf %70, %73 : vector<8x8xf32>
    %75 = math.exp %74 : vector<8x8xf32>
    %cst_26 = arith.constant dense<0.000000e+00> : vector<8xf32>
    %76 = vector.multi_reduction <add>, %75, %cst_26 [1] : vector<8x8xf32> to vector<8xf32>
    %77 = vector.shape_cast %76 : vector<8xf32> to vector<8x1xf32>
    %cst_27 = arith.constant dense<0.000000e+00> : vector<8x4xf32>
    %78 = tpu.matmul %75, %69, %cst_27 {dimension_numbers = #tpu.dot_dimension_numbers<[1], [0], [0], [1], [0, 0, 1, 1], [], []>} : vector<8x8xf32>, vector<8x4xf32>, vector<8x4xf32> -> vector<8x4xf32>
    %79 = tpu.reciprocal %77 {approx = true} : vector<8x1xf32> -> vector<8x1xf32>
    %80 = vector.broadcast %79 : vector<8x1xf32> to vector<8x4xf32>
    %81 = arith.mulf %78, %80 : vector<8x4xf32>
    %c0_28 = arith.constant 0 : index
    %c16 = arith.constant 16 : index
    %82 = vector.load %arg6[%c0_28, %c16] : memref<8x32xf32, #tpu.memory_space<vmem>>, vector<8x4xf32>
    tpu.vector_store %arg6[%c0_28, %c16], %81 {strides = array<i32>} : memref<8x32xf32, #tpu.memory_space<vmem>>, vector<8x4xf32>,
    %83 = vector.extract_strided_slice %2 {offsets = [0, 20], sizes = [8, 4], strides = [1, 1]} : vector<8x96xf32> to vector<8x4xf32>
    %84 = vector.extract_strided_slice %2 {offsets = [0, 52], sizes = [8, 4], strides = [1, 1]} : vector<8x96xf32> to vector<8x4xf32>
    %85 = vector.extract_strided_slice %2 {offsets = [0, 84], sizes = [8, 4], strides = [1, 1]} : vector<8x96xf32> to vector<8x4xf32>
    %cst_29 = arith.constant dense<0.000000e+00> : vector<8x8xf32>
    %86 = tpu.matmul %83, %84, %cst_29 {dimension_numbers = #tpu.dot_dimension_numbers<[1], [1], [0], [0], [0, 0, 1, 0], [], []>} : vector<8x4xf32>, vector<8x4xf32>, vector<8x8xf32> -> vector<8x8xf32>
    %cst_30 = arith.constant dense<0xFF800000> : vector<8xf32>
    %87 = vector.multi_reduction <maximumf>, %86, %cst_30 [1] : vector<8x8xf32> to vector<8xf32>
    %88 = vector.shape_cast %87 : vector<8xf32> to vector<8x1xf32>
    %89 = vector.broadcast %88 : vector<8x1xf32> to vector<8x8xf32>
    %90 = arith.subf %86, %89 : vector<8x8xf32>
    %91 = math.exp %90 : vector<8x8xf32>
    %cst_31 = arith.constant dense<0.000000e+00> : vector<8xf32>
    %92 = vector.multi_reduction <add>, %91, %cst_31 [1] : vector<8x8xf32> to vector<8xf32>
    %93 = vector.shape_cast %92 : vector<8xf32> to vector<8x1xf32>
    %cst_32 = arith.constant dense<0.000000e+00> : vector<8x4xf32>
    %94 = tpu.matmul %91, %85, %cst_32 {dimension_numbers = #tpu.dot_dimension_numbers<[1], [0], [0], [1], [0, 0, 1, 1], [], []>} : vector<8x8xf32>, vector<8x4xf32>, vector<8x4xf32> -> vector<8x4xf32>
    %95 = tpu.reciprocal %93 {approx = true} : vector<8x1xf32> -> vector<8x1xf32>
    %96 = vector.broadcast %95 : vector<8x1xf32> to vector<8x4xf32>
    %97 = arith.mulf %94, %96 : vector<8x4xf32>
    %c0_33 = arith.constant 0 : index
    %c20 = arith.constant 20 : index
    %98 = vector.load %arg6[%c0_33, %c20] : memref<8x32xf32, #tpu.memory_space<vmem>>, vector<8x4xf32>
    tpu.vector_store %arg6[%c0_33, %c20], %97 {strides = array<i32>} : memref<8x32xf32, #tpu.memory_space<vmem>>, vector<8x4xf32>,
    %99 = vector.extract_strided_slice %2 {offsets = [0, 24], sizes = [8, 4], strides = [1, 1]} : vector<8x96xf32> to vector<8x4xf32>
    %100 = vector.extract_strided_slice %2 {offsets = [0, 56], sizes = [8, 4], strides = [1, 1]} : vector<8x96xf32> to vector<8x4xf32>
    %101 = vector.extract_strided_slice %2 {offsets = [0, 88], sizes = [8, 4], strides = [1, 1]} : vector<8x96xf32> to vector<8x4xf32>
    %cst_34 = arith.constant dense<0.000000e+00> : vector<8x8xf32>
    %102 = tpu.matmul %99, %100, %cst_34 {dimension_numbers = #tpu.dot_dimension_numbers<[1], [1], [0], [0], [0, 0, 1, 0], [], []>} : vector<8x4xf32>, vector<8x4xf32>, vector<8x8xf32> -> vector<8x8xf32>
    %cst_35 = arith.constant dense<0xFF800000> : vector<8xf32>
    %103 = vector.multi_reduction <maximumf>, %102, %cst_35 [1] : vector<8x8xf32> to vector<8xf32>
    %104 = vector.shape_cast %103 : vector<8xf32> to vector<8x1xf32>
    %105 = vector.broadcast %104 : vector<8x1xf32> to vector<8x8xf32>
    %106 = arith.subf %102, %105 : vector<8x8xf32>
    %107 = math.exp %106 : vector<8x8xf32>
    %cst_36 = arith.constant dense<0.000000e+00> : vector<8xf32>
    %108 = vector.multi_reduction <add>, %107, %cst_36 [1] : vector<8x8xf32> to vector<8xf32>
    %109 = vector.shape_cast %108 : vector<8xf32> to vector<8x1xf32>
    %cst_37 = arith.constant dense<0.000000e+00> : vector<8x4xf32>
    %110 = tpu.matmul %107, %101, %cst_37 {dimension_numbers = #tpu.dot_dimension_numbers<[1], [0], [0], [1], [0, 0, 1, 1], [], []>} : vector<8x8xf32>, vector<8x4xf32>, vector<8x4xf32> -> vector<8x4xf32>
    %111 = tpu.reciprocal %109 {approx = true} : vector<8x1xf32> -> vector<8x1xf32>
    %112 = vector.broadcast %111 : vector<8x1xf32> to vector<8x4xf32>
    %113 = arith.mulf %110, %112 : vector<8x4xf32>
    %c0_38 = arith.constant 0 : index
    %c24 = arith.constant 24 : index
    %114 = vector.load %arg6[%c0_38, %c24] : memref<8x32xf32, #tpu.memory_space<vmem>>, vector<8x4xf32>
    tpu.vector_store %arg6[%c0_38, %c24], %113 {strides = array<i32>} : memref<8x32xf32, #tpu.memory_space<vmem>>, vector<8x4xf32>,
    %115 = vector.extract_strided_slice %2 {offsets = [0, 28], sizes = [8, 4], strides = [1, 1]} : vector<8x96xf32> to vector<8x4xf32>
    %116 = vector.extract_strided_slice %2 {offsets = [0, 60], sizes = [8, 4], strides = [1, 1]} : vector<8x96xf32> to vector<8x4xf32>
    %117 = vector.extract_strided_slice %2 {offsets = [0, 92], sizes = [8, 4], strides = [1, 1]} : vector<8x96xf32> to vector<8x4xf32>
    %cst_39 = arith.constant dense<0.000000e+00> : vector<8x8xf32>
    %118 = tpu.matmul %115, %116, %cst_39 {dimension_numbers = #tpu.dot_dimension_numbers<[1], [1], [0], [0], [0, 0, 1, 0], [], []>} : vector<8x4xf32>, vector<8x4xf32>, vector<8x8xf32> -> vector<8x8xf32>
    %cst_40 = arith.constant dense<0xFF800000> : vector<8xf32>
    %119 = vector.multi_reduction <maximumf>, %118, %cst_40 [1] : vector<8x8xf32> to vector<8xf32>
    %120 = vector.shape_cast %119 : vector<8xf32> to vector<8x1xf32>
    %121 = vector.broadcast %120 : vector<8x1xf32> to vector<8x8xf32>
    %122 = arith.subf %118, %121 : vector<8x8xf32>
    %123 = math.exp %122 : vector<8x8xf32>
    %cst_41 = arith.constant dense<0.000000e+00> : vector<8xf32>
    %124 = vector.multi_reduction <add>, %123, %cst_41 [1] : vector<8x8xf32> to vector<8xf32>
    %125 = vector.shape_cast %124 : vector<8xf32> to vector<8x1xf32>
    %cst_42 = arith.constant dense<0.000000e+00> : vector<8x4xf32>
    %126 = tpu.matmul %123, %117, %cst_42 {dimension_numbers = #tpu.dot_dimension_numbers<[1], [0], [0], [1], [0, 0, 1, 1], [], []>} : vector<8x8xf32>, vector<8x4xf32>, vector<8x4xf32> -> vector<8x4xf32>
    %127 = tpu.reciprocal %125 {approx = true} : vector<8x1xf32> -> vector<8x1xf32>
    %128 = vector.broadcast %127 : vector<8x1xf32> to vector<8x4xf32>
    %129 = arith.mulf %126, %128 : vector<8x4xf32>
    %c0_43 = arith.constant 0 : index
    %c28 = arith.constant 28 : index
    %130 = vector.load %arg6[%c0_43, %c28] : memref<8x32xf32, #tpu.memory_space<vmem>>, vector<8x4xf32>
    tpu.vector_store %arg6[%c0_43, %c28], %129 {strides = array<i32>} : memref<8x32xf32, #tpu.memory_space<vmem>>, vector<8x4xf32>,
    %c0_44 = arith.constant 0 : index
    %c0_45 = arith.constant 0 : index
    %131 = vector.load %arg6[%c0_44, %c0_45] : memref<8x32xf32, #tpu.memory_space<vmem>>, vector<8x32xf32>
    %c0_46 = arith.constant 0 : index
    %c0_47 = arith.constant 0 : index
    %132 = vector.load %arg3[%c0_46, %c0_47] : memref<32x32xf32, #tpu.memory_space<vmem>>, vector<32x32xf32>
    %cst_48 = arith.constant dense<0.000000e+00> : vector<8x32xf32>
    %133 = tpu.matmul %131, %132, %cst_48 {dimension_numbers = #tpu.dot_dimension_numbers<[1], [0], [0], [1], [0, 0, 1, 1], [], []>} : vector<8x32xf32>, vector<32x32xf32>, vector<8x32xf32> -> vector<8x32xf32>
    %c0_49 = arith.constant 0 : index
    %c0_50 = arith.constant 0 : index
    %134 = vector.load %arg4[%c0_49, %c0_50] : memref<1x32xf32, #tpu.memory_space<vmem>>, vector<1x32xf32>
    %135 = vector.broadcast %134 : vector<1x32xf32> to vector<8x32xf32>
    %136 = arith.addf %133, %135 : vector<8x32xf32>
    %c0_51 = arith.constant 0 : index
    %c0_52 = arith.constant 0 : index
    %137 = vector.load %arg5[%c0_51, %c0_52] : memref<8x32xf32, #tpu.memory_space<vmem>>, vector<8x32xf32>
    tpu.vector_store %arg5[%c0_51, %c0_52], %136 {strides = array<i32>} : memref<8x32xf32, #tpu.memory_space<vmem>>, vector<8x32xf32>,
    return
  }
  func.func @transform_0(%arg0: i32) -> (i32, i32) {
    %c0_i32 = arith.constant 0 : i32
    %c0_i32_0 = arith.constant 0 : i32
    return %arg0, %c0_i32 : i32, i32
  }
  func.func @transform_1(%arg0: i32) -> (i32, i32) {
    %c0_i32 = arith.constant 0 : i32
    %c0_i32_0 = arith.constant 0 : i32
    %c0_i32_1 = arith.constant 0 : i32
    return %c0_i32, %c0_i32_0 : i32, i32
  }
  func.func @transform_2(%arg0: i32) -> (i32, i32) {
    %c0_i32 = arith.constant 0 : i32
    %c0_i32_0 = arith.constant 0 : i32
    %c0_i32_1 = arith.constant 0 : i32
    return %c0_i32, %c0_i32_0 : i32, i32
  }
  func.func @transform_3(%arg0: i32) -> (i32, i32) {
    %c0_i32 = arith.constant 0 : i32
    %c0_i32_0 = arith.constant 0 : i32
    %c0_i32_1 = arith.constant 0 : i32
    return %c0_i32, %c0_i32_0 : i32, i32
  }
  func.func @transform_4(%arg0: i32) -> (i32, i32) {
    %c0_i32 = arith.constant 0 : i32
    %c0_i32_0 = arith.constant 0 : i32
    return %arg0, %c0_i32 : i32, i32
  }
}

</mosaic_0001>

<bundles_post_ra>
// kernel: tpu_custom_call.1
= control target key start
LH: loop header
LB: loop body
LE: loop exit
PB: predicated region body
PF: predicated region fallthrough
CT: control target
= control target key end

     0   :  { %9 = vsyncpa [#allocation4], 0  ;;  %s2816_s0 = inlined_call_operand.hbm [shape: f32[16,32], index: 0, kind: input, shape index: {}]   ;;  %s2817_s1 = inlined_call_operand.hbm [shape: f32[32,96], index: 1, kind: input, shape index: {}]   ;;  %s2818_s2 = inlined_call_operand.hbm [shape: f32[32,32], index: 2, kind: input, shape index: {}]   ;;  %s2819_s3 = inlined_call_operand.vmem [shape: f32[1,32], index: 3, kind: input, shape index: {}]   ;;  %s2820_s4 = inlined_call_operand.hbm [shape: f32[16,32], index: 4, kind: output, shape index: {}]  }
   0x1   :  { %11 = vsyncpa [#allocation4 + $0x1], 0 }
   0x2   :  { %12 = vsyncpa [#allocation7], 0 }
   0x3   :  { %13 = vsyncpa [#allocation5], 0 }
   0x4   :  { %15 = vsyncpa [#allocation5 + $0x1], 0  ;;  %s2429_s15 = smov 0   ;;  %s2431_s16 = smov 0  }
   0x5   :  { %s2433_s17 = smov 0   ;;  %s2435_s18 = smov 0  }
   0x6 LB: > { %s2450_s19 = sadd.s32 4294967295, %s2363_s18   ;;  %s1874_s20 = sadd.s32 4294967294, %s2363_s18   ;;  %s2363_s18 = sphi %s2435_s18, %s2840_s18   ;;  %s2359_s17 = sphi %s2433_s17, %s2839_s17   ;;  %s2355_s16 = sphi %s2431_s16, %s2838_s16   ;;  %s2351_s15 = sphi %s2429_s15, %s2837_s15  }
   0x7   : > { %p41_p0 = scmp.ne.s32.totalorder %s2355_s16, %s2351_s15  ;;  %p2821_p1 = scmp.eq.s32.totalorder %s2450_s19, 0 }
   0x8   : > { %p134_p3 = scmp.eq.s32.totalorder %s1874_s20, 1  ;;  %p1875_p5 = scmp.ge.s32.totalorder %s2363_s18, 1 }
   0x9   : > { %p2459_p4 = por %p2821_p1, %p41_p0  ;;  %p141_p7 = scmp.lt.s32.totalorder %s2363_s18, 3 }
   0xa   : > { %p2464_p6 = por %p134_p3, %p41_p0  ;;  %s2365_s24 = smov [#allocation6]  }
   0xb   : > { %s2824_s21 = scalar_select %p2459_p4, 1, 0 }
   0xc   : > { %s2825_s22 = scalar_select %p2464_p6, 1, 0 }
   0xd   : > { %p2469_p8 = pnand %p1875_p5, %p141_p7  ;;  %s153_s25 = sshll.u32 %s2365_s24, 4  ;;  %s2473_s25 = int_to_ptr.vmem [resolvable:$true] %s153_s25 }
   0xe   : > { %s2366_s27 = smov [#allocation8]   ;;  %s2207_s5 = scalar_lea.hbm %s2817_s1, 512 }
   0xf   : > { %p2085_p9 = pneg %p2469_p8  ;;  %s166_s28 = sshll.u32 %s2366_s27, 4  ;;  %s2484_s28 = int_to_ptr.vmem [resolvable:$true] %s166_s28 }
  0x10   : > { %p2208_p12 = scmp.ne.s32.totalorder %s2817_s1, %s2207_s5  ;;  %p2214_p5 = scmp.lt.u32.totalorder %s2207_s5, %s2817_s1 }
  0x11   : > { %p2480_p11 = pnand %p2085_p9, %p2821_p1 }
  0x13   : > { %p2209_p13 = pneg %p2480_p11 }
  0x15   : > { %p2210_p0 = pnand %p2209_p13, %p2208_p12 }
  0x17   : > { %p2211_p3 = pneg %p2210_p0 }
  0x19   : > { %p2216_p7 = pnand %p2214_p5, %p2211_p3 }
  0x1b   : > { %2219 = shalt.err (!%p2216_p7)
}
  0x1c   : > { %s2220_s10 = scalar_lea.vmem %s2473_s25, 512  ;;  %p2228_p2 = scmp.lt.s32.totalorder %s2473_s25, %s2473_s25 }
  0x1d   : > { %p2221_p9 = scmp.ne.s32.totalorder %s2473_s25, %s2220_s10  ;;  %p2229_p12 = scmp.lt.s32.totalorder %s2220_s10, %s2220_s10 }
  0x1f   : > { %p2223_p10 = pnand %p2221_p9, %p2209_p13  ;;  %p2230_p0 = por %p2229_p12, %p2228_p2 }
  0x21   : > { %p2224_p1 = pneg %p2223_p10 }
  0x23   : > { %p2231_p6 = pnand %p2230_p0, %p2224_p1 }
  0x25   : > { %2234 = shalt.err (!%p2231_p6)
}
  0x26   : > { %s2367_s11 = smov 128   ;;  %s2368_s12 = smov 8  }
  0x27   : > { %2088 = dma.hbm_to_vmem [thread:$0]  (!%p2480_p11), %s2817_s1, 512, %s2473_s25, [#allocation7], %s2367_s11, %s2367_s11, %s2368_s12  }
  0x28   : > { %s2235_s27 = scalar_lea.hbm %s2818_s2, 512 }
  0x29   : > { %p2236_p2 = scmp.ne.s32.totalorder %s2818_s2, %s2235_s27  ;;  %p2242_p10 = scmp.lt.u32.totalorder %s2235_s27, %s2818_s2 }
  0x2b   : > { %p2238_p1 = pnand %p2236_p2, %p2209_p13 }
  0x2d   : > { %p2239_p6 = pneg %p2238_p1 }
  0x2f   : > { %p2244_p3 = pnand %p2242_p10, %p2239_p6 }
  0x31   : > { %2247 = shalt.err (!%p2244_p3)
}
  0x32   : > { %s2248_s25 = scalar_lea.vmem %s2484_s28, 512  ;;  %p2256_p12 = scmp.lt.s32.totalorder %s2484_s28, %s2484_s28 }
  0x33   : > { %p2249_p5 = scmp.ne.s32.totalorder %s2484_s28, %s2248_s25  ;;  %p2257_p0 = scmp.lt.s32.totalorder %s2248_s25, %s2248_s25 }
  0x35   : > { %p2251_p7 = pnand %p2249_p5, %p2209_p13  ;;  %p2258_p2 = por %p2257_p0, %p2256_p12 }
  0x37   : > { %p2252_p9 = pneg %p2251_p7 }
  0x39   : > { %p2259_p1 = pnand %p2258_p2, %p2252_p9 }
  0x3b   : > { %2262 = shalt.err (!%p2259_p1)
}
  0x3c   : > { %2091 = dma.hbm_to_vmem [thread:$0]  (!%p2480_p11), %s2818_s2, 512, %s2484_s28, [#allocation7], %s2367_s11, %s2367_s11, %s2368_s12  }
  0x3d   : > { %s2539_s9 = sadd.s32 1, %s2363_s18   ;;  %s28_s26 = sadd.s32 1, %s2359_s17 }
  0x3e   : > { %s25_s10 = ssub.s32 %s2363_s18, %s2539_s9  ;;  %p35_p13 = scmp.ne.s32.totalorder %s2359_s17, %s2355_s16 }
  0x3f   : > { %p26_p6 = scmp.eq.s32.totalorder %s25_s10, 0  ;;  %p36_p10 = scmp.eq.s32.totalorder %s2363_s18, 0 }
  0x40   : > { %p2828_p3 = scmp.eq.s32.totalorder %s2450_s19, 1  ;;  %p2102_p7 = scmp.lt.s32.totalorder %s2363_s18, 2 }
  0x41   : > { %s2555_s14 = scalar_select %p26_p6, %s2359_s17, %s28_s26  }
  0x42   : > { %p2549_p5 = por %p2828_p3, %p35_p13  ;;  %p37_p9 = por %p36_p10, %p35_p13 }
  0x43   : > { %s183_s20 = sand.u32 1, %s2359_s17   ;;  %s1880_s28 = sshll.u32 %s2363_s18, 7 }
  0x44   : > { %s2829_s13 = scalar_select %p2549_p5, 1, 0 }
  0x45   : > { %s1879_s24 = sshll.u32 %s183_s20, 3  ;;  %s2562_s27 = scalar_lea.hbm %s2816_s0, %s1880_s28 }
  0x46   : > { %s187_s29 = scalar_lea.vmem [#allocation3], %s1879_s24  ;;  %p2566_p11 = pnand %p2102_p7, %p37_p9 }
  0x47   : > { %s194_s30 = sshll.u32 %s187_s29, 4  ;;  %s184_s6 = scalar_lea.sflag [#allocation4], %s183_s20  ;;  %s2564_s30 = int_to_ptr.vmem [resolvable:$true] %s194_s30 }
  0x48   : > { %s2263_s25 = scalar_lea.hbm %s2562_s27, 128  ;;  %p2265_p0 = pneg %p2566_p11 }
  0x49   : > { %p2264_p12 = scmp.ne.s32.totalorder %s2562_s27, %s2263_s25  ;;  %s2268_s26 = scalar_lea.hbm %s2816_s0, 256 }
  0x4a   : > { %p2269_p13 = scmp.lt.u32.totalorder %s2562_s27, %s2816_s0  ;;  %p2270_p6 = scmp.lt.u32.totalorder %s2268_s26, %s2263_s25 }
  0x4b   : > { %p2266_p2 = pnand %p2265_p0, %p2264_p12  ;;  %p2272_p3 = scmp.lt.u32.totalorder %s2263_s25, %s2562_s27 }
  0x4c   : > { %p2271_p10 = por %p2270_p6, %p2269_p13 }
  0x4d   : > { %p2267_p1 = pneg %p2266_p2 }
  0x4e   : > { %p2273_p7 = por %p2272_p3, %p2271_p10 }
  0x50   : > { %p2274_p9 = pnand %p2273_p7, %p2267_p1 }
  0x52   : > { %2277 = shalt.err (!%p2274_p9)
}
  0x53   : > { %s2278_s20 = scalar_lea.vmem %s2564_s30, 128  ;;  %s2369_s28 = smov [#allocation3]  }
  0x54   : > { %p2279_p12 = scmp.ne.s32.totalorder %s2564_s30, %s2278_s20  ;;  %s2283_s11 = sshll.u32 %s2369_s28, 4  ;;  %s2284_s11 = int_to_ptr.vmem [resolvable:$false] %s2283_s11 }
  0x55   : > { %s2285_s12 = scalar_lea.vmem %s2284_s11, 256  ;;  %p2286_p4 = scmp.lt.s32.totalorder %s2564_s30, %s2284_s11 }
  0x56   : > { %p2281_p2 = pnand %p2279_p12, %p2265_p0  ;;  %p2287_p13 = scmp.lt.s32.totalorder %s2285_s12, %s2278_s20 }
  0x58   : > { %p2282_p5 = pneg %p2281_p2  ;;  %p2288_p6 = por %p2287_p13, %p2286_p4 }
  0x5a   : > { %p2289_p10 = pnand %p2288_p6, %p2282_p5 }
  0x5c   : > { %2292 = shalt.err (!%p2289_p10)
}
  0x5d   : > { %2095 = dma.hbm_to_vmem [thread:$0]  (!%p2566_p11), %s2562_s27, 128, %s2564_s30, %s184_s6  }
  0x5e   : > { %203 = sbr.rel (%p2469_p8) target bundleno = 1778 (0x6f2), region = 36  ;;  %s2598_s29 = sand.u32 (!%p2469_p8), 1, %s2355_s16  }
  0x5f   : > { %s1882_s25 = sshll.u32 (!%p2469_p8), %s2598_s29, 3  ;;  %s206_s7 = scalar_lea.sflag (!%p2469_p8), [#allocation4], %s2598_s29 }
  0x60   : > { %s209_s8 = scalar_lea.vmem (!%p2469_p8), [#allocation3], %s1882_s25  ;;  %p2831_p4 = scmp.ne.s32.totalorder (!%p2469_p8), %s2824_s21, 0 }
  0x65   : > { %2338 = dma.done.wait (%p2831_p4), %s206_s7, 128  }
  0x66   : > { %2340 = vsyncadd (%p2831_p4), %s206_s7, 4294967168  ;;  %p2832_p5 = scmp.eq.s32.totalorder %s2450_s19, 0 }
  0x68   : > { %2342 = dma.done.wait (%p2832_p5), [#allocation7], 1024   ;;  %p2833_p8 = pmov %p2832_p5 }
  0x69   : > { %v2370_v0 = vmov 0.0|0.0   ;;  %vm2371_vm0 = vmmov 0   ;;  %v2372_v1 = vmov 0.0   ;;  %v243_v2 = vld [vmem:[#allocation6] sm:$0xff]  ;;  %v244_v3 = vld [vmem:[#allocation6 + $0x8] sm:$0xff]  ;;  %v245_v4 = vld [vmem:[#allocation6 + $0x10] sm:$0xff] }
  0x6a   : > { %2344 = vsyncadd (%p2833_p8), [#allocation7], 4294966272  ;;  %2061 = vmatprep.subr.bf16.mxu0 %v2370_v0  ;;  %1967 = vmatprep.mubr.msk.f32.mxu0 %vm2371_vm0, %v2372_v1  ;;  %v2062_v5 = vpack.c.bf16 %v244_v3, %v243_v2  ;;  %v246_v6 = vld [vmem:[#allocation6 + $0x18] sm:$0xff]  ;;  %vm247_vm1 = vcmask 261120   ;;  %s2373_s21 = smov 64   ;;  %s2374_s23 = smov 96  }
  0x6b   : > { %1970 = vmatprep.subr.mxu1 %v2372_v1  ;;  %1972 = vmatprep.mubr.msk.f32.mxu1 %vm2371_vm0, %v2372_v1  ;;  %v2065_v7 = vpack.c.bf16 %v246_v6, %v245_v4  ;;  %v242_v8 = vld [vmem:[%s209_s8] sm:$0xff]  ;;  %s2375_s27 = smov 92   ;;  %s2376_s30 = smov 124   ;;  %vm324_vm2 = vcmask 31744   ;;  %vm399_vm3 = vcmask 64512   ;;  %vm657_vm4 = vcmask 64544  }
  0x6c   : > { %2063 = vmatpush3.bf16.msra.mxu0 %v2062_v5  ;;  %s2377_s5 = smov 88   ;;  %s2378_s6 = smov 120   ;;  %vm828_vm5 = vcmask 97344   ;;  %vm999_vm6 = vcmask 130144   ;;  %vm1170_vm7 = vcmask 162944   ;;  %vm1341_vm8 = vcmask 195744  }
  0x6d   : > { %2064 = vmatprep.subr.bf16.mxu0 %v2370_v0  ;;  %s2379_s26 = smov 84   ;;  %s2380_s10 = smov 116   ;;  %vm1512_vm9 = vcmask 228544   ;;  %vm1683_vm10 = vcmask 261344  }
  0x6e   : > { %s2381_s24 = smov 80   ;;  %s2382_s20 = smov 112  }
  0x6f   : > { %s2383_s28 = smov 108   ;;  %s2384_s11 = smov 72  }
  0x70   : > { %2066 = vmatpush3.bf16.msra.mxu0 %v2065_v7  ;;  %s2385_s12 = smov 104   ;;  %s2386_s7 = smov 68  }
  0x71   : > { %1990 = vmatprep.subr.mxu0 %v2372_v1  ;;  %s2387_s8 = smov 100   ;;  %p2834_p0 = scmp.ne.s32.totalorder %s2829_s13, 0 }
  0x73   : > { %1968 = vmatmul.mubr.msk.f32.vlgmr.msra.gmra.mrb[0].mxu0 %vm247_vm1, %v242_v8 }
  0x74   : > { %1992 = vmatprep.mubr.msk.f32.mxu0 %vm2371_vm0, %v2372_v1 }
 0x146   : > { %v2623_v9 = vpop.f32.mrb[0].mxu0 }
 0x147   : > { %409 = vrot.lane.b32.xlu1 %v2623_v9, %s2373_s21  ;;  %322 = vrot.lane.b32.xlu0 %v2623_v9, %s2374_s23  ;;  %v1969_v10 = vpop.f32.mrb[1].mxu0  ;;  %s2388_s21 = smov 56   ;;  %s2389_s23 = smov 76  }
 0x14b   : > { %490 = vrot.lane.b32.xlu1 %v2623_v9, %s2375_s27  ;;  %s2390_s27 = smov 60  }
 0x14f   : > { %488 = vrot.lane.b32.xlu1 %v2623_v9, %s2376_s30  ;;  %s2391_s30 = smov 44  }
 0x153   : > { %661 = vrot.lane.b32.xlu1 %v2623_v9, %s2377_s5  ;;  %s2392_s5 = smov 52  }
 0x157   : > { %659 = vrot.lane.b32.xlu1 %v2623_v9, %s2378_s6  ;;  %s2393_s6 = smov 36  }
 0x15b   : > { %832 = vrot.lane.b32.xlu1 %v2623_v9, %s2379_s26  ;;  %s2394_s26 = smov 48  }
 0x15f   : > { %830 = vrot.lane.b32.xlu1 %v2623_v9, %s2380_s10  ;;  %s2395_s10 = smov 40  }
 0x163   : > { %1003 = vrot.lane.b32.xlu1 %v2623_v9, %s2381_s24  ;;  %s2396_s24 = smov 4  }
 0x167   : > { %1001 = vrot.lane.b32.xlu1 %v2623_v9, %s2382_s20  ;;  %s2397_s20 = smov 8  }
 0x16b   : > { %1172 = vrot.lane.b32.xlu1 %v2623_v9, %s2383_s28  ;;  %s2398_s28 = smov 12  }
 0x16f   : > { %1345 = vrot.lane.b32.xlu1 %v2623_v9, %s2384_s11  ;;  %s2399_s11 = smov 16  }
 0x173   : > { %1343 = vrot.lane.b32.xlu1 %v2623_v9, %s2385_s12  ;;  %s2400_s12 = smov 20  }
 0x177   : > { %1516 = vrot.lane.b32.xlu1 %v2623_v9, %s2386_s7  ;;  %s2401_s7 = smov 24  }
 0x17b   : > { %1514 = vrot.lane.b32.xlu1 %v2623_v9, %s2387_s8  ;;  %s2402_s8 = smov 28  }
 0x17f   : > { %746 = vrot.lane.b32.xlu1 %v2623_v9, %s2388_s21 }
 0x1b9   : > { %v410_v11 = vpop.permute.xlu1 %409  ;;  %v323_v12 = vpop.permute.xlu0 %322 }
 0x1ba   : > { %1971 = vmatpush3.xpose.msk.msra.mxu1 %vm324_vm2, %v323_v12 }
 0x1bb   : > { %1975 = vmatprep.subr.mxu1 %v2372_v1 }
 0x1bd   : > { %v2643_v13 = vpop.permute.xlu1 %490  ;;  %1973 = vmatmul.mubr.msk.f32.vlgmr.msra.gmra.mrb[0].mxu1 %vm324_vm2, %v2623_v9 }
 0x1be   : > { %1976 = vmatpush3.msra.mxu1 %v410_v11  ;;  %1977 = vmatprep.mubr.msk.f32.mxu1 %vm2371_vm0, %v2372_v1 }
 0x1bf   : > { %1980 = vmatprep.subr.mxu1 %v2372_v1 }
 0x1c1   : > { %v2650_v14 = vpop.permute.xlu1 %488 }
 0x1c5   : > { %v662_v15 = vpop.permute.xlu1 %661 }
 0x1c6   : > { %1991 = vmatpush3.xpose.msk.msra.mxu0 %vm324_vm2, %v662_v15 }
 0x1c7   : > { %2000 = vmatprep.subr.mxu0 %v2372_v1 }
 0x1c9   : > { %v660_v16 = vpop.permute.xlu1 %659 }
 0x1ca   : > { %1993 = vmatmul.mubr.msk.f32.vlgmr.msra.gmra.mrb[2].mxu0 %vm324_vm2, %v660_v16 }
 0x1cb   : > { %2002 = vmatprep.mubr.msk.f32.mxu0 %vm2371_vm0, %v2372_v1 }
 0x1cd   : > { %v833_v17 = vpop.permute.xlu1 %832 }
 0x1ce   : > { %2001 = vmatpush3.xpose.msk.msra.mxu0 %vm324_vm2, %v833_v17 }
 0x1cf   : > { %2010 = vmatprep.subr.mxu0 %v2372_v1 }
 0x1d1   : > { %v831_v18 = vpop.permute.xlu1 %830 }
 0x1d2   : > { %2003 = vmatmul.mubr.msk.f32.vlgmr.msra.gmra.mrb[4].mxu0 %vm324_vm2, %v831_v18 }
 0x1d3   : > { %2012 = vmatprep.mubr.msk.f32.mxu0 %vm2371_vm0, %v2372_v1 }
 0x1d5   : > { %v1004_v19 = vpop.permute.xlu1 %1003 }
 0x1d6   : > { %2011 = vmatpush3.xpose.msk.msra.mxu0 %vm324_vm2, %v1004_v19 }
 0x1d7   : > { %2020 = vmatprep.subr.mxu0 %v2372_v1 }
 0x1d9   : > { %v1002_v20 = vpop.permute.xlu1 %1001 }
 0x1da   : > { %2013 = vmatmul.mubr.msk.f32.vlgmr.msra.gmra.mrb[6].mxu0 %vm324_vm2, %v1002_v20 }
 0x1db   : > { %2022 = vmatprep.mubr.msk.f32.mxu0 %vm2371_vm0, %v2372_v1 }
 0x1dd   : > { %v1173_v33 = vpop.permute.xlu1 %1172 }
 0x1e1   : > { %v1346_v34 = vpop.permute.xlu1 %1345 }
 0x1e5   : > { %v1344_v37 = vpop.permute.xlu1 %1343 }
 0x1e9   : > { %v1517_v40 = vpop.permute.xlu1 %1516 }
 0x1ed   : > { %v1515_v42 = vpop.permute.xlu1 %1514 }
 0x1f1   : > { %v747_v11 = vpop.permute.xlu1 %746 }
 0x290   : > { %v395_v21 = vpop.f32.mrb[0].mxu1 }
 0x291   : > { %v1974_v22 = vpop.f32.mrb[1].mxu1  ;;  %v400_v23 = vsel %vm399_vm3, %v395_v21, -inf }
 0x292   : > { %401 = vmax.xlane.f32.xlu0 %v400_v23 }
 0x29d   : > { %v2668_v24 = vpop.f32.mrb[2].mxu0 }
 0x29e   : > { %v1994_v25 = vpop.f32.mrb[3].mxu0  ;;  %v737_v30 = vsel %vm399_vm3, %v2668_v24, -inf }
 0x2a5   : > { %v2670_v26 = vpop.f32.mrb[4].mxu0 }
 0x2a6   : > { %v2004_v27 = vpop.f32.mrb[5].mxu0  ;;  %v908_v31 = vsel %vm399_vm3, %v2670_v26, -inf }
 0x2a8   : > { %1174 = vrot.lane.b32.xlu0 %v2623_v9, %s2389_s23 }
 0x2ac   : > { %575 = vrot.lane.b32.xlu0 %v2623_v9, %s2390_s27  ;;  %s1914_s27 = sshll.u32 %s2450_s19, 7 }
 0x2ad   : > { %v2674_v28 = vpop.f32.mrb[6].mxu0 }
 0x2ae   : > { %v2014_v29 = vpop.f32.mrb[7].mxu0  ;;  %v1079_v32 = vsel %vm399_vm3, %v2674_v28, -inf }
 0x2cb   : > { %738 = vmax.xlane.f32.xlu0 %v737_v30 }
 0x2cf   : > { %909 = vmax.xlane.f32.xlu0 %v908_v31 }
 0x2d3   : > { %1080 = vmax.xlane.f32.xlu0 %v1079_v32 }
 0x31f   : > { %v402_v35 = vpop.xlane.xlu0 %401 }
 0x320   : > { %v403_v36 = vsub.f32 %v395_v21, %v402_v35 }
 0x322   : > { %v404_v38 = vmul.f32 1.442695, %v403_v36 }
 0x323   : > { %v1175_v39 = vpop.permute.xlu0 %1174 }
 0x324   : > { %2175 = vpow2.f32 %v404_v38  ;;  %2021 = vmatpush3.xpose.msk.msra.mxu0 %vm324_vm2, %v1175_v39 }
 0x325   : > { %2030 = vmatprep.subr.mxu0 %v2372_v1 }
 0x327   : > { %2023 = vmatmul.mubr.msk.f32.vlgmr.msra.gmra.mrb[8].mxu0 %vm324_vm2, %v1173_v33  ;;  %v576_v43 = vpop.permute.xlu0 %575 }
 0x328   : > { %2031 = vmatpush3.xpose.msk.msra.mxu0 %vm324_vm2, %v1346_v34  ;;  %2032 = vmatprep.mubr.msk.f32.mxu0 %vm2371_vm0, %v2372_v1 }
 0x329   : > { %2040 = vmatprep.subr.mxu0 %v2372_v1 }
 0x32b   : > { %2033 = vmatmul.mubr.msk.f32.vlgmr.msra.gmra.mrb[10].mxu0 %vm324_vm2, %v1344_v37 }
 0x32c   : > { %2041 = vmatpush3.xpose.msk.msra.mxu0 %vm324_vm2, %v1517_v40  ;;  %2042 = vmatprep.mubr.msk.f32.mxu0 %vm2371_vm0, %v2372_v1 }
 0x32d   : > { %2067 = vmatprep.subr.bf16.mxu0 %v2370_v0 }
 0x32e   : > { %v2694_v41 = vpop.eup %2175 }
 0x32f   : > { %1978 = vmatmul.mubr.msk.f32.vlgmr.msra.gmra.mrb[2].mxu1 %vm399_vm3, %v2694_v41  ;;  %2043 = vmatmul.mubr.msk.f32.vlgmr.msra.gmra.mrb[12].mxu0 %vm324_vm2, %v1515_v42 }
 0x330   : > { %1981 = vmatpush3.xpose.msk.msra.mxu1 %vm324_vm2, %v2643_v13  ;;  %1982 = vmatprep.mubr.msk.f32.mxu1 %vm2371_vm0, %v2372_v1 }
 0x331   : > { %1985 = vmatprep.subr.mxu1 %v2372_v1  ;;  %2058 = vmatprep.mubr.msk.f32.mxu0 %vm2371_vm0, %v2372_v1 }
 0x333   : > { %1983 = vmatmul.mubr.msk.f32.vlgmr.msra.gmra.mrb[4].mxu1 %vm324_vm2, %v2650_v14 }
 0x334   : > { %1986 = vmatpush3.msra.mxu1 %v576_v43  ;;  %1987 = vmatprep.mubr.msk.f32.mxu1 %vm2371_vm0, %v2372_v1 }
 0x335   : > { %1995 = vmatprep.subr.mxu1 %v2372_v1 }
 0x358   : > { %v739_v58 = vpop.xlane.xlu0 %738 }
 0x359   : > { %v740_v60 = vsub.f32 %v2668_v24, %v739_v58 }
 0x35b   : > { %v741_v61 = vmul.f32 1.442695, %v740_v60 }
 0x35c   : > { %v910_v59 = vpop.xlane.xlu0 %909 }
 0x35d   : > { %v911_v62 = vsub.f32 %v2670_v26, %v910_v59  ;;  %2177 = vpow2.f32 %v741_v61  ;;  %v406_v26 = vsel %vm399_vm3, %v2694_v41, 0.0 }
 0x35f   : > { %v912_v2 = vmul.f32 1.442695, %v911_v62 }
 0x360   : > { %v1081_v63 = vpop.xlane.xlu0 %1080 }
 0x361   : > { %v1082_v3 = vsub.f32 %v2674_v28, %v1081_v63  ;;  %2179 = vpow2.f32 %v912_v2  ;;  %v1686_v63 = vld [vmem:[#allocation8] sm:$0xff]  ;;  %v1687_v2 = vld [vmem:[#allocation8 + $0x8] sm:$0xff] }
 0x363   : > { %v1083_v4 = vmul.f32 1.442695, %v1082_v3  ;;  %v2068_v3 = vpack.c.bf16 %v1687_v2, %v1686_v63 }
 0x365   : > { %2181 = vpow2.f32 %v1083_v4  ;;  %v1688_v4 = vld [vmem:[#allocation8 + $0x10] sm:$0xff]  ;;  %2069 = vmatpush3.bf16.msra.mxu0 %v2068_v3 }
 0x366   : > { %2070 = vmatprep.subr.bf16.mxu0 %v2370_v0 }
 0x367   : > { %v2178_v5 = vpop.eup %2177 }
 0x368   : > { %v743_v6 = vsel %vm399_vm3, %v2178_v5, 0.0 }
 0x36b   : > { %v2180_v7 = vpop.eup %2179 }
 0x36c   : > { %v914_v8 = vsel %vm399_vm3, %v2180_v7, 0.0 }
 0x3fa   : > { %v1246_v44 = vpop.f32.mrb[8].mxu0 }
 0x3fb   : > { %v2024_v45 = vpop.f32.mrb[9].mxu0  ;;  %v1250_v46 = vsel %vm399_vm3, %v1246_v44, -inf }
 0x3fc   : > { %1251 = vmax.xlane.f32.xlu1 %v1250_v46 }
 0x3fe   : > { %v1417_v47 = vpop.f32.mrb[10].mxu0 }
 0x3ff   : > { %v2034_v48 = vpop.f32.mrb[11].mxu0  ;;  %v1421_v49 = vsel %vm399_vm3, %v1417_v47, -inf }
 0x400   : > { %1422 = vmax.xlane.f32.xlu0 %v1421_v49 }
 0x402   : > { %v2713_v50 = vpop.f32.mrb[2].mxu1  ;;  %v1588_v51 = vpop.f32.mrb[12].mxu0 }
 0x403   : > { %v1979_v52 = vpop.f32.mrb[3].mxu1  ;;  %v2044_v53 = vpop.f32.mrb[13].mxu0  ;;  %v1592_v54 = vsel %vm399_vm3, %v1588_v51, -inf }
 0x404   : > { %1593 = vmax.xlane.f32.xlu1 %v1592_v54 }
 0x406   : > { %v562_v55 = vpop.f32.mrb[4].mxu1 }
 0x407   : > { %v1984_v56 = vpop.f32.mrb[5].mxu1  ;;  %v566_v57 = vsel %vm399_vm3, %v562_v55, -inf }
 0x408   : > { %567 = vmax.xlane.f32.xlu1 %v566_v57 }
 0x416   : > { %1259 = vrot.lane.b32.xlu0 %v2623_v9, %s2391_s30  ;;  %s241_s30 = scalar_lea.vmem [#allocation9], %s1882_s25  ;;  %s2403_s25 = smov [#allocation9]  }
 0x419   : > { %917 = vrot.lane.b32.xlu1 %v2623_v9, %s2392_s5  ;;  %s1785_s5 = sshll.u32 %s241_s30, 4  ;;  %s2773_s5 = int_to_ptr.vmem [resolvable:$true] %s1785_s5 }
 0x41a   : > { %1601 = vrot.lane.b32.xlu0 %v2623_v9, %s2393_s6  ;;  %s2293_s19 = scalar_lea.vmem %s2773_s5, 128 }
 0x41b   : > { %p2294_p11 = scmp.ne.s32.totalorder %s2773_s5, %s2293_s19 }
 0x41d   : > { %1088 = vrot.lane.b32.xlu1 %v2623_v9, %s2394_s26  ;;  %p2295_p1 = pnand %p2294_p11, %p2834_p0 }
 0x41f   : > { %p2296_p3 = pneg %p2295_p1 }
 0x421   : > { %1430 = vrot.lane.b32.xlu1 %v2623_v9, %s2395_s10  ;;  %v2182_v9 = vpop.eup %2181  ;;  %s2771_s10 = scalar_lea.hbm %s2820_s4, %s1914_s27 }
 0x422   : > { %v1085_v10 = vsel %vm399_vm3, %v2182_v9, 0.0 }
 0x439   : > { %744 = vadd.xlane.f32.xlu0 %v743_v6 }
 0x43d   : > { %915 = vadd.xlane.f32.xlu0 %v914_v8 }
 0x441   : > { %1086 = vadd.xlane.f32.xlu0 %v1085_v10 }
 0x489   : > { %v1252_v12 = vpop.xlane.xlu1 %1251 }
 0x48a   : > { %v1253_v17 = vsub.f32 %v1246_v44, %v1252_v12 }
 0x48c   : > { %v1254_v20 = vmul.f32 1.442695, %v1253_v17 }
 0x48d   : > { %v1423_v13 = vpop.xlane.xlu0 %1422 }
 0x48e   : > { %v1424_v14 = vsub.f32 %v1417_v47, %v1423_v13 }
 0x490   : > { %v1425_v15 = vmul.f32 1.442695, %v1424_v14 }
 0x491   : > { %v1594_v16 = vpop.xlane.xlu1 %1593  ;;  %v1260_v35 = vpop.permute.xlu0 %1259 }
 0x492   : > { %2183 = vpow2.f32 %v1425_v15  ;;  %v1595_v21 = vsub.f32 %v1588_v51, %v1594_v16 }
 0x494   : > { %v1596_v24 = vmul.f32 1.442695, %v1595_v21 }
 0x495   : > { %v568_v18 = vpop.xlane.xlu1 %567  ;;  %v1602_v37 = vpop.permute.xlu0 %1601 }
 0x496   : > { %v569_v19 = vsub.f32 %v562_v55, %v568_v18 }
 0x498   : > { %v570_v22 = vmul.f32 1.442695, %v569_v19 }
 0x499   : > { %v918_v30 = vpop.permute.xlu1 %917 }
 0x49a   : > { %2185 = vpow2.f32 %v570_v22 }
 0x49b   : > { %2187 = vpow2.f32 %v1254_v20 }
 0x49c   : > { %v2184_v23 = vpop.eup %2183  ;;  %2189 = vpow2.f32 %v1596_v24 }
 0x49d   : > { %v1427_v25 = vsel %vm399_vm3, %v2184_v23, 0.0  ;;  %v1089_v33 = vpop.permute.xlu1 %1088 }
 0x49e   : > { %1428 = vadd.xlane.f32.xlu0 %v1427_v25 }
 0x4a1   : > { %v1431_v36 = vpop.permute.xlu1 %1430 }
 0x4a2   : > { %407 = vadd.xlane.f32.xlu0 %v406_v26  ;;  %v1911_v26 = vld [vmem:[%s2819_s3] ss:$0 sm:$0xff] }
 0x4a4   : > { %v2186_v27 = vpop.eup %2185 }
 0x4a5   : > { %1988 = vmatmul.mubr.msk.f32.vlgmr.msra.gmra.mrb[6].mxu1 %vm399_vm3, %v2186_v27  ;;  %v572_v28 = vsel %vm399_vm3, %v2186_v27, 0.0  ;;  %v2188_v29 = vpop.eup %2187 }
 0x4a6   : > { %1996 = vmatpush3.msra.mxu1 %v747_v11  ;;  %573 = vadd.xlane.f32.xlu1 %v572_v28  ;;  %v1256_v31 = vsel %vm399_vm3, %v2188_v29, 0.0  ;;  %v2190_v32 = vpop.eup %2189 }
 0x4a7   : > { %1997 = vmatprep.mubr.msk.f32.mxu1 %vm2371_vm0, %v2372_v1  ;;  %2005 = vmatprep.subr.mxu1 %v2372_v1  ;;  %v1598_v34 = vsel %vm399_vm3, %v2190_v32, 0.0 }
 0x4a9   : > { %1998 = vmatmul.mubr.msk.f32.vlgmr.msra.gmra.mrb[8].mxu1 %vm399_vm3, %v2178_v5  ;;  %v1689_v5 = vld [vmem:[#allocation8 + $0x18] sm:$0xff] }
 0x4aa   : > { %2006 = vmatpush3.msra.mxu1 %v918_v30  ;;  %1257 = vadd.xlane.f32.xlu1 %v1256_v31  ;;  %v2071_v8 = vpack.c.bf16 %v1689_v5, %v1688_v4 }
 0x4ab   : > { %2007 = vmatprep.mubr.msk.f32.mxu1 %vm2371_vm0, %v2372_v1  ;;  %2015 = vmatprep.subr.mxu1 %v2372_v1 }
 0x4ac   : > { %2072 = vmatpush3.bf16.msra.mxu0 %v2071_v8 }
 0x4ad   : > { %2008 = vmatmul.mubr.msk.f32.vlgmr.msra.gmra.mrb[10].mxu1 %vm399_vm3, %v2180_v7 }
 0x4ae   : > { %2016 = vmatpush3.msra.mxu1 %v1089_v33  ;;  %1599 = vadd.xlane.f32.xlu1 %v1598_v34 }
 0x4af   : > { %2017 = vmatprep.mubr.msk.f32.mxu1 %vm2371_vm0, %v2372_v1  ;;  %2025 = vmatprep.subr.mxu1 %v2372_v1 }
 0x4b1   : > { %2018 = vmatmul.mubr.msk.f32.vlgmr.msra.gmra.mrb[12].mxu1 %vm399_vm3, %v2182_v9 }
 0x4b2   : > { %2026 = vmatpush3.msra.mxu1 %v1260_v35  ;;  %2027 = vmatprep.mubr.msk.f32.mxu1 %vm2371_vm0, %v2372_v1 }
 0x4b3   : > { %2035 = vmatprep.subr.mxu1 %v2372_v1 }
 0x4b5   : > { %2028 = vmatmul.mubr.msk.f32.vlgmr.msra.gmra.mrb[14].mxu1 %vm399_vm3, %v2188_v29 }
 0x4b6   : > { %2036 = vmatpush3.msra.mxu1 %v1431_v36  ;;  %2037 = vmatprep.mubr.msk.f32.mxu1 %vm2371_vm0, %v2372_v1 }
 0x4b7   : > { %2045 = vmatprep.subr.mxu1 %v2372_v1 }
 0x4b9   : > { %2038 = vmatmul.mubr.msk.f32.vlgmr.msra.gmra.mrb[16].mxu1 %vm399_vm3, %v2184_v23 }
 0x4ba   : > { %2046 = vmatpush3.msra.mxu1 %v1602_v37  ;;  %2047 = vmatprep.mubr.msk.f32.mxu1 %vm2371_vm0, %v2372_v1 }
 0x4bd   : > { %2048 = vmatmul.mubr.msk.f32.vlgmr.msra.gmra.mrb[18].mxu1 %vm399_vm3, %v2190_v32 }
 0x4c6   : > { %v745_v38 = vpop.xlane.xlu0 %744 }
 0x4ca   : > { %v916_v39 = vpop.xlane.xlu0 %915 }
 0x4ce   : > { %v1087_v40 = vpop.xlane.xlu0 %1086 }
 0x52b   : > { %v1429_v41 = vpop.xlane.xlu0 %1428 }
 0x52f   : > { %v408_v42 = vpop.xlane.xlu0 %407 }
 0x530   : > { %2191 = vrcp.f32 %v408_v42 }
 0x533   : > { %v574_v45 = vpop.xlane.xlu1 %573 }
 0x534   : > { %2193 = vrcp.f32 %v574_v45 }
 0x535   : > { %2195 = vrcp.f32 %v745_v38 }
 0x536   : > { %2197 = vrcp.f32 %v916_v39 }
 0x537   : > { %2199 = vrcp.f32 %v1087_v40  ;;  %v1258_v49 = vpop.xlane.xlu1 %1257 }
 0x538   : > { %2201 = vrcp.f32 %v1258_v49 }
 0x539   : > { %2203 = vrcp.f32 %v1429_v41 }
 0x53a   : > { %v2192_v43 = vpop.eup %2191 }
 0x53b   : > { %v486_v44 = vmul.f32 %v2192_v43, %v2713_v50  ;;  %v1600_v58 = vpop.xlane.xlu1 %1599 }
 0x53c   : > { %2205 = vrcp.f32 %v1600_v58 }
 0x53d   : > { %487 = vst.msk [vmem:[#allocation2] sm:$0xff] %vm324_vm2, %v486_v44 }
 0x53e   : > { %v2194_v46 = vpop.eup %2193 }
 0x53f   : > { %v2196_v51 = vpop.eup %2195 }
 0x540   : > { %v2198_v50 = vpop.eup %2197 }
 0x541   : > { %v2200_v59 = vpop.eup %2199 }
 0x542   : > { %v2202_v6 = vpop.eup %2201 }
 0x543   : > { %v2204_v11 = vpop.eup %2203 }
 0x546   : > { %v2206_v15 = vpop.eup %2205 }
 0x578   : > { %v647_v47 = vpop.f32.mrb[6].mxu1 }
 0x579   : > { %v652_v1 = vmul.f32 %v2194_v46, %v647_v47  ;;  %v1989_v48 = vpop.f32.mrb[7].mxu1 }
 0x57b   : > { %654 = vrot.lane.b32.xlu1 %v652_v1, %s2396_s24  ;;  %s1772_s24 = scalar_lea.sflag [#allocation5], %s2598_s29 }
 0x57c   : > { %v818_v52 = vpop.f32.mrb[8].mxu1 }
 0x57d   : > { %v823_v53 = vmul.f32 %v2196_v51, %v818_v52  ;;  %v1999_v54 = vpop.f32.mrb[9].mxu1 }
 0x57f   : > { %825 = vrot.lane.b32.xlu0 %v823_v53, %s2397_s20  ;;  %s2297_s20 = sshll.u32 %s2403_s25, 4  ;;  %s2298_s20 = int_to_ptr.vmem [resolvable:$false] %s2297_s20 }
 0x580   : > { %v989_v55 = vpop.f32.mrb[10].mxu1  ;;  %p2300_p7 = scmp.lt.s32.totalorder %s2773_s5, %s2298_s20 }
 0x581   : > { %v994_v56 = vmul.f32 %v2198_v50, %v989_v55  ;;  %v2009_v57 = vpop.f32.mrb[11].mxu1 }
 0x583   : > { %996 = vrot.lane.b32.xlu1 %v994_v56, %s2398_s28  ;;  %s2299_s28 = scalar_lea.vmem %s2298_s20, 256 }
 0x584   : > { %v1160_v60 = vpop.f32.mrb[12].mxu1  ;;  %p2301_p9 = scmp.lt.s32.totalorder %s2299_s28, %s2293_s19 }
 0x585   : > { %v1165_v61 = vmul.f32 %v2200_v59, %v1160_v60  ;;  %v2019_v62 = vpop.f32.mrb[13].mxu1 }
 0x586   : > { %p2302_p12 = por %p2301_p9, %p2300_p7 }
 0x587   : > { %1167 = vrot.lane.b32.xlu1 %v1165_v61, %s2399_s11 }
 0x588   : > { %v1331_v7 = vpop.f32.mrb[14].mxu1  ;;  %p2303_p2 = pnand %p2302_p12, %p2296_p3 }
 0x589   : > { %v1336_v9 = vmul.f32 %v2202_v6, %v1331_v7  ;;  %v2029_v10 = vpop.f32.mrb[15].mxu1 }
 0x58b   : > { %1338 = vrot.lane.b32.xlu1 %v1336_v9, %s2400_s12 }
 0x58c   : > { %v1502_v12 = vpop.f32.mrb[16].mxu1 }
 0x58d   : > { %v1507_v13 = vmul.f32 %v2204_v11, %v1502_v12  ;;  %v2039_v14 = vpop.f32.mrb[17].mxu1 }
 0x58f   : > { %1509 = vrot.lane.b32.xlu0 %v1507_v13, %s2401_s7 }
 0x590   : > { %v1673_v16 = vpop.f32.mrb[18].mxu1 }
 0x591   : > { %v1678_v17 = vmul.f32 %v2206_v15, %v1673_v16  ;;  %v2049_v18 = vpop.f32.mrb[19].mxu1 }
 0x593   : > { %1680 = vrot.lane.b32.xlu1 %v1678_v17, %s2402_s8 }
 0x5ed   : > { %v655_v19 = vpop.permute.xlu1 %654 }
 0x5ee   : > { %658 = vst.msk [vmem:[#allocation2] sm:$0xff] %vm657_vm4, %v655_v19 }
 0x5f1   : > { %v826_v0 = vpop.permute.xlu0 %825 }
 0x5f2   : > { %829 = vst.msk [vmem:[#allocation2] sm:$0xff] %vm828_vm5, %v826_v0 }
 0x5f5   : > { %v997_v20 = vpop.permute.xlu1 %996 }
 0x5f6   : > { %1000 = vst.msk [vmem:[#allocation2] sm:$0xff] %vm999_vm6, %v997_v20 }
 0x5f9   : > { %v1168_v21 = vpop.permute.xlu1 %1167 }
 0x5fa   : > { %1171 = vst.msk [vmem:[#allocation2] sm:$0xff] %vm1170_vm7, %v1168_v21 }
 0x5fd   : > { %v1339_v22 = vpop.permute.xlu1 %1338 }
 0x5fe   : > { %1342 = vst.msk [vmem:[#allocation2] sm:$0xff] %vm1341_vm8, %v1339_v22 }
 0x601   : > { %v1510_v23 = vpop.permute.xlu0 %1509 }
 0x602   : > { %1513 = vst.msk [vmem:[#allocation2] sm:$0xff] %vm1512_vm9, %v1510_v23 }
 0x605   : > { %v1681_v24 = vpop.permute.xlu1 %1680 }
 0x606   : > { %1684 = vst.msk [vmem:[#allocation2] sm:$0xff] %vm1683_vm10, %v1681_v24 }
 0x60d   : > { %v1685_v25 = vld [vmem:[#allocation2] sm:$0xff] }
 0x60e   : > { %2059 = vmatmul.mubr.msk.f32.vlgmr.msra.gmra.mrb[14].mxu0 %vm247_vm1, %v1685_v25 }
 0x6e1   : > { %v1766_v27 = vpop.f32.mrb[14].mxu0 }
 0x6e2   : > { %v1767_v28 = vadd.f32 %v1911_v26, %v1766_v27  ;;  %v2060_v29 = vpop.f32.mrb[15].mxu0 }
 0x6e4   : > { %1770 = vst.msk [vmem:[%s241_s30] sm:$0xff] %vm247_vm1, %v1767_v28 }
 0x6e5   : > { %2306 = shalt.err (!%p2303_p2)
}
 0x6e6   : > { %s2307_s29 = scalar_lea.hbm %s2771_s10, 128  ;;  %s2311_s7 = scalar_lea.hbm %s2820_s4, 256 }
 0x6e7   : > { %p2308_p13 = scmp.ne.s32.totalorder %s2771_s10, %s2307_s29  ;;  %p2312_p4 = scmp.lt.u32.totalorder %s2771_s10, %s2820_s4 }
 0x6e8   : > { %p2313_p5 = scmp.lt.u32.totalorder %s2311_s7, %s2307_s29  ;;  %p2315_p11 = scmp.lt.u32.totalorder %s2307_s29, %s2771_s10 }
 0x6e9   : > { %p2309_p6 = pnand %p2308_p13, %p2834_p0 }
 0x6ea   : > { %p2314_p8 = por %p2313_p5, %p2312_p4 }
 0x6eb   : > { %p2310_p10 = pneg %p2309_p6 }
 0x6ec   : > { %p2316_p1 = por %p2315_p11, %p2314_p8 }
 0x6ee   : > { %p2317_p3 = pnand %p2316_p1, %p2310_p10 }
 0x6f0   : > { %2320 = shalt.err (!%p2317_p3)
}
 0x6f1   : > { %2083 = dma.vmem_to_hbm [thread:$0]  (%p2834_p0), %s2773_s5, 128, %s2771_s10, %s1772_s24  }
 0x6f2 PF: > { %s1797_s23 = sand.u32 1, %s2351_s15   ;;  %p2835_p7 = scmp.ne.s32.totalorder %s2825_s22, 0 }
 0x6f3   : > { %p2836_p9 = scmp.ge.s32.totalorder %s2363_s18, 2  ;;  %s1798_s27 = scalar_lea.sflag [#allocation5], %s1797_s23 }
 0x6f5   : > { %p2097_p12 = pnand %p2836_p9, %p2835_p7 }
 0x6f7   : > { %2346 = dma.done.wait (!%p2097_p12), %s1798_s27, 128  }
 0x6f8   : > { %2348 = vsyncadd (!%p2097_p12), %s1798_s27, 4294967168  ;;  %p18_p2 = scmp.ge.s32.totalorder %s2539_s9, 4   ;;  %s2837_s15 = smov %s2355_s16 }
 0x6f9   : > { %s2838_s16 = smov %s2359_s17  ;;  %s2839_s17 = smov %s2555_s14 }
 0x6fa   : > { %s2840_s18 = smov %s2539_s9  ;;  %20 = sbr.rel (!%p18_p2) target bundleno = 6 (0x6), region = 89 }
 0x701   :  { %1803 = vsyncpa [#allocation4], 1 }
 0x702   :  { %1805 = vsyncpa [#allocation4 + $0x1], 1 }
 0x703   :  { %1806 = vsyncpa [#allocation7], 1 }
 0x704   :  { %1807 = vsyncpa [#allocation5], 1 }
 0x705   :  { %1809 = vsyncpa [#allocation5 + $0x1], 1 }

</bundles_post_ra>
